<compile_context>
chip_gen: v5e
topology: v5e:2x2
jax: 0.10.0
libtpu: 0.0.40
codegen_flags: <defaults>
</compile_context>

<pallas_src>
import functools

import jax
import jax.numpy as jnp
from jax.experimental import pallas as pl
from jax.experimental.pallas import tpu as pltpu


def _split_mlp_kernel(x_ref, w1_ref, w2_ref, w3_ref, b_ref, o_ref, *, split_mid):
    # x_ref : (bt, 66) bf16        w1_ref: (66, 2*H1)  bf16
    # w2_ref: (2*H1, 2*H2) bf16    w3_ref: (2*H2, Nout_pad=128) bf16
    # b_ref : (3, BW) f32          o_ref : (bt, Nout_pad) f32
    h1n = w1_ref.shape[-1]
    h2n = w2_ref.shape[-1]
    n_out = w3_ref.shape[-1]
    b = b_ref[...]

    # Layer 1: Linear -> bias -> ReLU (dropout = identity in eval mode).
    h = jnp.dot(x_ref[...], w1_ref[...], preferred_element_type=jnp.float32)
    h = jnp.maximum(h + b[0:1, :h1n], 0.0)
    h = h.astype(w2_ref.dtype)

    # Layer 2: block-diagonal.  On 128x128-MXU chips (v5e) do the two diagonal blocks
    # as separate 128-wide dots to skip the all-zero off-diagonal tile passes.
    if split_mid:
        hh = h1n // 2
        hk = h2n // 2
        h2a = jnp.dot(h[:, :hh], w2_ref[:hh, :hk], preferred_element_type=jnp.float32)
        h2b = jnp.dot(h[:, hh:], w2_ref[hh:, hk:], preferred_element_type=jnp.float32)
        h2 = jnp.concatenate([h2a, h2b], axis=-1)
    else:
        h2 = jnp.dot(h, w2_ref[...], preferred_element_type=jnp.float32)
    h2 = jnp.maximum(h2 + b[1:2, :h2n], 0.0)
    h2 = h2.astype(w3_ref.dtype)

    # Layer 3: packed + lane-padded to 128 output columns -> unmasked lane-dense store.
    out = jnp.dot(h2, w3_ref[...], preferred_element_type=jnp.float32)
    o_ref[...] = (out + b[2:3, :n_out]).astype(o_ref.dtype)


def _choose_bt(batch, block_b, sub=16):
    """Pick a batch tile: multiple of the sublane tile, divides B, prefer >=2 steps."""
    if batch <= sub or batch % sub != 0:
        return batch
    bt = min(block_b, batch)
    bt -= bt % sub
    while batch % bt != 0:
        bt -= sub
    if bt == batch:                      # force >=2 grid steps (v7x has 2 TensorCores)
        half = batch // 2
        if half % sub == 0:
            bt = half
    return bt


def _mxu_is_128():
    """Best-effort detection of 128x128-MXU chips (v5e); packed 256 form elsewhere."""
    try:
        kind = jax.devices()[0].device_kind.lower()
    except Exception:
        return False
    return ("v5e" in kind) or ("v5 lite" in kind) or ("v5litepod" in kind)


def split_ann_forward(x, packed_params, *, block_b=1024):
    """x: (B, descriptor + 2*split) -> (B, 2*output_split) f32, ordered [ep | epp]."""
    w1p, w2p, w3p, bias, n_valid_out = packed_params
    B, total_in = x.shape
    assert total_in == w1p.shape[0]
    n_out_pad = w3p.shape[-1]

    # Halve the dominant HBM stream; MXU accumulation stays f32 inside the kernel.
    x = x.astype(w1p.dtype)

    bt = _choose_bt(B, block_b)
    assert B % bt == 0
    grid = (B // bt,)

    kernel = functools.partial(_split_mlp_kernel, split_mid=_mxu_is_128())

    out = pl.pallas_call(
        kernel,
        out_shape=jax.ShapeDtypeStruct((B, n_out_pad), jnp.float32),
        grid_spec=pltpu.PrefetchScalarGridSpec(
            num_scalar_prefetch=0,
            grid=grid,
            in_specs=[
                pl.BlockSpec((bt, total_in), lambda i: (i, 0)),
                # Constant index maps: weights DMA'd once, stay VMEM-resident.
                pl.BlockSpec(w1p.shape, lambda i: (0, 0)),
                pl.BlockSpec(w2p.shape, lambda i: (0, 0)),
                pl.BlockSpec(w3p.shape, lambda i: (0, 0)),
                pl.BlockSpec(bias.shape, lambda i: (0, 0)),
            ],
            out_specs=pl.BlockSpec((bt, n_out_pad), lambda i: (i, 0)),
        ),
        compiler_params=pltpu.CompilerParams(
            dimension_semantics=("parallel",),
        ),
    )(x, w1p, w2p, w3p, bias)

    return out[:, :n_valid_out]


def init_params(key, descriptor_dim=6, input_split_dim=30,
                hidden_1=128, hidden_2=128, output_split_dim=30):
    """Per-half params stacked on axis 0 (matches the PyTorch module's two SimpleANNs)."""
    din = descriptor_dim + input_split_dim
    dims = [(din, hidden_1), (hidden_1, hidden_2), (hidden_2, output_split_dim)]
    keys = jax.random.split(key, 6)
    params = []
    for i, (fan_in, fan_out) in enumerate(dims):
        bound = 1.0 / jnp.sqrt(fan_in)
        w = jax.random.uniform(keys[2 * i], (2, fan_in, fan_out),
                               minval=-bound, maxval=bound, dtype=jnp.float32)
        b = jax.random.uniform(keys[2 * i + 1], (2, 1, fan_out),
                               minval=-bound, maxval=bound, dtype=jnp.float32)
        params += [w, b]
    return tuple(params)


def pack_params(params, descriptor_dim=6, input_split_dim=30,
                weight_dtype=jnp.bfloat16):
    """Pack per-half params into block-diagonal bf16 weights + one f32 bias table."""
    w1, b1, w2, b2, w3, b3 = params
    d, s = descriptor_dim, input_split_dim
    h1, h2, dout = w1.shape[-1], w2.shape[-1], w3.shape[-1]
    total_in = d + 2 * s
    n_valid_out = 2 * dout
    n_out_pad = ((n_valid_out + 127) // 128) * 128   # lane-dense output width

    # Layer 1: fold x_ep / x_epp slicing into the weight matrix (descriptor rows feed
    # both halves; split-1 rows feed only ep, split-2 rows feed only epp).
    w1p = jnp.zeros((total_in, 2 * h1), jnp.float32)
    w1p = w1p.at[:d, :h1].set(w1[0, :d])
    w1p = w1p.at[d:d + s, :h1].set(w1[0, d:])
    w1p = w1p.at[:d, h1:].set(w1[1, :d])
    w1p = w1p.at[d + s:, h1:].set(w1[1, d:])

    # Layer 2: block diagonal (halves stay independent through the ReLUs).
    w2p = jnp.zeros((2 * h1, 2 * h2), jnp.float32)
    w2p = w2p.at[:h1, :h2].set(w2[0])
    w2p = w2p.at[h1:, h2:].set(w2[1])

    # Layer 3: block diagonal, padded on the right to a 128-multiple output width.
    w3p = jnp.zeros((2 * h2, n_out_pad), jnp.float32)
    w3p = w3p.at[:h2, :dout].set(w3[0])
    w3p = w3p.at[h2:, dout:n_valid_out].set(w3[1])

    # All biases in one (3, BW) f32 table; padded columns stay zero.
    bw = max(2 * h1, 2 * h2, n_out_pad)
    bias = jnp.zeros((3, bw), jnp.float32)
    bias = bias.at[0, :2 * h1].set(b1.reshape(-1))
    bias = bias.at[1, :2 * h2].set(b2.reshape(-1))
    bias = bias.at[2, :n_valid_out].set(b3.reshape(-1))

    return (w1p.astype(weight_dtype), w2p.astype(weight_dtype),
            w3p.astype(weight_dtype), bias, n_valid_out)


if __name__ == "__main__":
    key = jax.random.PRNGKey(0)
    k_x, k_p = jax.random.split(key)

    B = 8
    d, s = 6, 30
    total_in = d + 2 * s   # 66
    x = jax.random.normal(k_x, (B, total_in), dtype=jnp.float32)

    params = init_params(k_p, descriptor_dim=d, input_split_dim=s)
    packed = pack_params(params, descriptor_dim=d, input_split_dim=s)

    out = split_ann_forward(x, packed)
    out = jax.block_until_ready(out)

    assert out.shape == (B, 60), out.shape
    assert out.dtype == jnp.float32

    # Pure-JAX f32 reference of the original per-half SplitANN math (eval mode).
    def ref(x, params):
        w1, b1, w2, b2, w3, b3 = params
        x_ep = x[:, :d + s]
        x_epp = jnp.concatenate([x[:, :d], x[:, d + s:]], axis=-1)
        outs = []
        for h, xin in enumerate([x_ep, x_epp]):
            a = jnp.maximum(xin @ w1[h] + b1[h], 0.0)
            a = jnp.maximum(a @ w2[h] + b2[h], 0.0)
            outs.append(a @ w3[h] + b3[h])
        return jnp.concatenate(outs, axis=-1)

    ref_out = ref(x, params)
    # Tolerance relaxed vs. pure-f32: weights/activations flow through the MXU in bf16
    # (accumulation is f32), so per-element error is bounded but > 1e-4.
    assert jnp.allclose(out, ref_out, atol=3e-2, rtol=3e-2), \
        float(jnp.max(jnp.abs(out - ref_out)))

    print("KERNEL_OK")
</pallas_src>

<mosaic_0001>
module attributes {stable_mosaic.version = 11 : i64} {
  func.func @_split_mlp_kernel(%arg0: i32, %arg1: memref<8x66xbf16, #tpu.memory_space<vmem>>, %arg2: memref<66x256xbf16, #tpu.memory_space<vmem>>, %arg3: memref<256x256xbf16, #tpu.memory_space<vmem>>, %arg4: memref<256x128xbf16, #tpu.memory_space<vmem>>, %arg5: memref<3x256xf32, #tpu.memory_space<vmem>>, %arg6: memref<8x128xf32, #tpu.memory_space<vmem>>) attributes {dimension_semantics = [#tpu.dimension_semantics<parallel>], iteration_bounds = array<i64: 1>, scalar_prefetch = 0 : i64, scratch_operands = 0 : i64, tpu.core_type = #tpu.core_type<tc>, window_params = [{transform_indices = @transform_0, window_bounds = array<i64: 8, 66>}, {pipeline_mode = #tpu.pipeline_mode<synchronous>, transform_indices = @transform_1, window_bounds = array<i64: 66, 256>}, {pipeline_mode = #tpu.pipeline_mode<synchronous>, transform_indices = @transform_2, window_bounds = array<i64: 256, 256>}, {pipeline_mode = #tpu.pipeline_mode<synchronous>, transform_indices = @transform_3, window_bounds = array<i64: 256, 128>}, {pipeline_mode = #tpu.pipeline_mode<synchronous>, transform_indices = @transform_4, window_bounds = array<i64: 3, 256>}, {transform_indices = @transform_5, window_bounds = array<i64: 8, 128>}]} {
    %c0 = arith.constant 0 : index
    %c0_0 = arith.constant 0 : index
    %0 = vector.load %arg5[%c0, %c0_0] : memref<3x256xf32, #tpu.memory_space<vmem>>, vector<3x256xf32>
    %c0_1 = arith.constant 0 : index
    %c0_2 = arith.constant 0 : index
    %1 = vector.load %arg1[%c0_1, %c0_2] : memref<8x66xbf16, #tpu.memory_space<vmem>>, vector<8x66xbf16>
    %c0_3 = arith.constant 0 : index
    %c0_4 = arith.constant 0 : index
    %2 = vector.load %arg2[%c0_3, %c0_4] : memref<66x256xbf16, #tpu.memory_space<vmem>>, vector<66x256xbf16>
    %cst = arith.constant dense<0.000000e+00> : vector<8x256xf32>
    %3 = tpu.matmul %1, %2, %cst {dimension_numbers = #tpu.dot_dimension_numbers<[1], [0], [0], [1], [0, 0, 1, 1], [], []>} : vector<8x66xbf16>, vector<66x256xbf16>, vector<8x256xf32> -> vector<8x256xf32>
    %4 = vector.extract_strided_slice %0 {offsets = [0, 0], sizes = [1, 256], strides = [1, 1]} : vector<3x256xf32> to vector<1x256xf32>
    %5 = vector.broadcast %4 : vector<1x256xf32> to vector<8x256xf32>
    %6 = arith.addf %3, %5 : vector<8x256xf32>
    %cst_5 = arith.constant 0.000000e+00 : f32
    %7 = vector.broadcast %cst_5 : f32 to vector<8x256xf32>
    %8 = arith.maximumf %6, %7 : vector<8x256xf32>
    %9 = arith.truncf %8 : vector<8x256xf32> to vector<8x256xbf16>
    %c0_6 = arith.constant 0 : index
    %c0_7 = arith.constant 0 : index
    %10 = vector.load %arg3[%c0_6, %c0_7] : memref<256x256xbf16, #tpu.memory_space<vmem>>, vector<256x256xbf16>
    %cst_8 = arith.constant dense<0.000000e+00> : vector<8x256xf32>
    %11 = tpu.matmul %9, %10, %cst_8 {dimension_numbers = #tpu.dot_dimension_numbers<[1], [0], [0], [1], [0, 0, 1, 1], [], []>} : vector<8x256xbf16>, vector<256x256xbf16>, vector<8x256xf32> -> vector<8x256xf32>
    %12 = vector.extract_strided_slice %0 {offsets = [1, 0], sizes = [1, 256], strides = [1, 1]} : vector<3x256xf32> to vector<1x256xf32>
    %13 = vector.broadcast %12 : vector<1x256xf32> to vector<8x256xf32>
    %14 = arith.addf %11, %13 : vector<8x256xf32>
    %cst_9 = arith.constant 0.000000e+00 : f32
    %15 = vector.broadcast %cst_9 : f32 to vector<8x256xf32>
    %16 = arith.maximumf %14, %15 : vector<8x256xf32>
    %17 = arith.truncf %16 : vector<8x256xf32> to vector<8x256xbf16>
    %c0_10 = arith.constant 0 : index
    %c0_11 = arith.constant 0 : index
    %18 = vector.load %arg4[%c0_10, %c0_11] : memref<256x128xbf16, #tpu.memory_space<vmem>>, vector<256x128xbf16>
    %cst_12 = arith.constant dense<0.000000e+00> : vector<8x128xf32>
    %19 = tpu.matmul %17, %18, %cst_12 {dimension_numbers = #tpu.dot_dimension_numbers<[1], [0], [0], [1], [0, 0, 1, 1], [], []>} : vector<8x256xbf16>, vector<256x128xbf16>, vector<8x128xf32> -> vector<8x128xf32>
    %20 = vector.extract_strided_slice %0 {offsets = [2, 0], sizes = [1, 128], strides = [1, 1]} : vector<3x256xf32> to vector<1x128xf32>
    %21 = vector.broadcast %20 : vector<1x128xf32> to vector<8x128xf32>
    %22 = arith.addf %19, %21 : vector<8x128xf32>
    %c0_13 = arith.constant 0 : index
    %c0_14 = arith.constant 0 : index
    %23 = vector.load %arg6[%c0_13, %c0_14] : memref<8x128xf32, #tpu.memory_space<vmem>>, vector<8x128xf32>
    tpu.vector_store %arg6[%c0_13, %c0_14], %22 {strides = array<i32>} : memref<8x128xf32, #tpu.memory_space<vmem>>, vector<8x128xf32>,
    return
  }
  func.func @transform_0(%arg0: i32) -> (i32, i32) {
    %c0_i32 = arith.constant 0 : i32
    %c0_i32_0 = arith.constant 0 : i32
    return %arg0, %c0_i32 : i32, i32
  }
  func.func @transform_1(%arg0: i32) -> (i32, i32) {
    %c0_i32 = arith.constant 0 : i32
    %c0_i32_0 = arith.constant 0 : i32
    %c0_i32_1 = arith.constant 0 : i32
    return %c0_i32, %c0_i32_0 : i32, i32
  }
  func.func @transform_2(%arg0: i32) -> (i32, i32) {
    %c0_i32 = arith.constant 0 : i32
    %c0_i32_0 = arith.constant 0 : i32
    %c0_i32_1 = arith.constant 0 : i32
    return %c0_i32, %c0_i32_0 : i32, i32
  }
  func.func @transform_3(%arg0: i32) -> (i32, i32) {
    %c0_i32 = arith.constant 0 : i32
    %c0_i32_0 = arith.constant 0 : i32
    %c0_i32_1 = arith.constant 0 : i32
    return %c0_i32, %c0_i32_0 : i32, i32
  }
  func.func @transform_4(%arg0: i32) -> (i32, i32) {
    %c0_i32 = arith.constant 0 : i32
    %c0_i32_0 = arith.constant 0 : i32
    %c0_i32_1 = arith.constant 0 : i32
    return %c0_i32, %c0_i32_0 : i32, i32
  }
  func.func @transform_5(%arg0: i32) -> (i32, i32) {
    %c0_i32 = arith.constant 0 : i32
    %c0_i32_0 = arith.constant 0 : i32
    return %arg0, %c0_i32 : i32, i32
  }
}

</mosaic_0001>

<bundles_post_ra>
// kernel: tpu_custom_call.1
= control target key start
LH: loop header
LB: loop body
LE: loop exit
PB: predicated region body
PF: predicated region fallthrough
CT: control target
= control target key end

     0   :  { %10 = vsyncpa [#allocation3], 0  ;;  %s1138_s0 = inlined_call_operand.hbm [shape: bf16[8,66], index: 0, kind: input, shape index: {}]   ;;  %s1139_s1 = inlined_call_operand.hbm [shape: bf16[66,256], index: 1, kind: input, shape index: {}]   ;;  %s1140_s2 = inlined_call_operand.hbm [shape: bf16[256,256], index: 2, kind: input, shape index: {}]   ;;  %s1141_s3 = inlined_call_operand.hbm [shape: bf16[256,128], index: 3, kind: input, shape index: {}]   ;;  %s1142_s4 = inlined_call_operand.hbm [shape: f32[3,256], index: 4, kind: input, shape index: {}]   ;;  %s1143_s5 = inlined_call_operand.hbm [shape: f32[8,128], index: 5, kind: output, shape index: {}]  }
   0x1   :  { %11 = vsyncpa [#allocation6], 0 }
   0x2   :  { %12 = vsyncpa [#allocation9], 0  ;;  %s29_s20 = sshll.u32 %s1139_s1, 4  ;;  %s30_s20 = int_to_ptr.hbm [resolvable:$true] %s29_s20 }
   0x3   :  { %13 = vsyncpa [#allocation4], 0  ;;  %s1073_s21 = smov [#allocation5]   ;;  %s55_s25 = sshll.u32 %s1141_s3, 4  ;;  %s56_s25 = int_to_ptr.hbm [resolvable:$true] %s55_s25 }
   0x4   :  { %s31_s22 = sshll.u32 %s1073_s21, 4  ;;  %s1074_s26 = smov 128   ;;  %s32_s22 = int_to_ptr.vmem [resolvable:$true] %s31_s22 }
   0x5   :  { %s1075_s27 = smov 8   ;;  %s1076_s28 = smov [#allocation8]  }
   0x6   :  { %37 = dma.hbm_to_vmem [thread:$0]  %s30_s20, 1152, %s32_s22, [#allocation6], %s1074_s26, %s1074_s26, %s1075_s27  }
   0x7   :  { %s57_s29 = sshll.u32 %s1076_s28, 4  ;;  %s1077_s30 = smov 64   ;;  %s58_s29 = int_to_ptr.vmem [resolvable:$true] %s57_s29 }
   0x8   :  { %s1078_s6 = smov 4   ;;  %s19_s8 = sshll.u32 %s1138_s0, 4  ;;  %s20_s8 = int_to_ptr.hbm [resolvable:$true] %s19_s8 }
   0x9   :  { %63 = dma.hbm_to_vmem [thread:$0]  %s56_s25, 2048, %s58_s29, [#allocation9], %s1077_s30, %s1077_s30, %s1078_s6  }
   0xa   :  { %s1079_s9 = smov [#allocation2]   ;;  %s42_s12 = sshll.u32 %s1140_s2, 4  ;;  %s43_s12 = int_to_ptr.hbm [resolvable:$true] %s42_s12 }
   0xb   :  { %s21_s10 = sshll.u32 %s1079_s9, 4  ;;  %s1080_s13 = smov [#allocation7]   ;;  %s22_s10 = int_to_ptr.vmem [resolvable:$true] %s21_s10 }
   0xc   :  { %24 = dma.hbm_to_vmem [thread:$0]  %s20_s8, 64, %s22_s10, [#allocation3]  }
   0xd   :  { %s44_s14 = sshll.u32 %s1080_s13, 4  ;;  %s69_s17 = sshll.u32 %s1142_s4, 4  ;;  %s45_s14 = int_to_ptr.vmem [resolvable:$true] %s44_s14  ;;  %s70_s17 = int_to_ptr.hbm [resolvable:$true] %s69_s17 }
   0xe   :  { %50 = dma.hbm_to_vmem [thread:$0]  %s43_s12, 4096, %s45_s14, [#allocation6], %s1074_s26, %s1074_s26, %s1075_s27  }
   0xf   :  { %s1081_s0 = smov [#allocation10]  }
  0x10   :  { %s71_s18 = sshll.u32 %s1081_s0, 4  ;;  %s72_s18 = int_to_ptr.vmem [resolvable:$true] %s71_s18 }
  0x11   :  { %74 = dma.hbm_to_vmem [thread:$0]  %s70_s17, 128, %s72_s18, [#allocation9]  }
  0x12   :  { %1065 = dma.done.wait [#allocation3], 64  }
  0x13   :  { %1066 = vsyncadd [#allocation3], 4294967232 }
  0x14   :  { %1067 = dma.done.wait [#allocation6], 5248  }
  0x15   :  { %1068 = vsyncadd [#allocation6], 4294962048 }
  0x16   :  { %1069 = dma.done.wait [#allocation9], 2176  }
  0x17   :  { %1070 = vsyncadd [#allocation9], 4294965120  ;;  %v106_v0 = vld [vmem:[#allocation5 + $0x40] sm:$0x11]  ;;  %vm163_vm0 = vcmask 1040384   ;;  %vm159_vm1 = vcmask 539648  }
  0x18   :  { %v139_v1 = vunpack.c.l.b16 %v106_v0  ;;  %v140_v2 = vunpack.c.h.b16 %v106_v0  ;;  %v655_v3 = vld [vmem:[#allocation5 + $0x30] sm:$0xf]  ;;  %v862_v6 = vld [vmem:[#allocation5 + $0x34] sm:$0xf0]  ;;  %v861_v7 = vld [vmem:[#allocation5 + $0x34] sm:$0xf] }
  0x19   :  { %v657_v8 = vld [vmem:[#allocation5 + $0x38] sm:$0xf0]  ;;  %v647_v11 = vld [vmem:[#allocation5 + $0x20] sm:$0xf]  ;;  %v860_v12 = vld [vmem:[#allocation5 + $0x24] sm:$0xf0]  ;;  %v656_v13 = vor.u32 %v862_v6, %v655_v3 }
  0x1a   :  { %v149_v4 = vpack.c.b16 %v139_v1, %v139_v1  ;;  %v150_v5 = vpack.c.b16 %v140_v2, %v140_v2  ;;  %v660_v14 = vor.u32 %v861_v7, %v657_v8  ;;  %v859_v15 = vld [vmem:[#allocation5 + $0x24] sm:$0xf]  ;;  %v721_v16 = vld [vmem:[#allocation7 + $0x70] sm:$0xf]  ;;  %v878_v17 = vld [vmem:[#allocation7 + $0x74] sm:$0xf0]  ;;  %v648_v26 = vor.u32 %v860_v12, %v647_v11 }
  0x1b   :  { %v649_v18 = vld [vmem:[#allocation5 + $0x28] sm:$0xf0]  ;;  %v722_v19 = vor.u32 %v878_v17, %v721_v16  ;;  %v785_v20 = vld [vmem:[#allocation7 + $0xf0] sm:$0xf]  ;;  %v894_v21 = vld [vmem:[#allocation7 + $0xf4] sm:$0xf0] }
  0x1c   :  { %v165_v9 = vsel %vm163_vm0, %v149_v4, 0  ;;  %v168_v10 = vsel %vm163_vm0, %v150_v5, 0  ;;  %v786_v22 = vor.u32 %v894_v21, %v785_v20  ;;  %v713_v23 = vld [vmem:[#allocation7 + $0x60] sm:$0xf]  ;;  %v876_v24 = vld [vmem:[#allocation7 + $0x64] sm:$0xf0]  ;;  %v652_v27 = vor.u32 %v859_v15, %v649_v18 }
  0x1d   :  { %173 = vmatpush.bf16.msra.mxu0 %v165_v9  ;;  %186 = vmatpush.bf16.msra.mxu1 %v168_v10  ;;  %v777_v25 = vld [vmem:[#allocation7 + $0xe0] sm:$0xf]  ;;  %v639_v28 = vld [vmem:[#allocation5 + $0x10] sm:$0xf]  ;;  %v858_v29 = vld [vmem:[#allocation5 + $0x14] sm:$0xf0]  ;;  %v714_v30 = vor.u32 %v876_v24, %v713_v23 }
  0x1e   :  { %398 = vmatpush.bf16.msra.mxu2 %v722_v19  ;;  %v892_v31 = vld [vmem:[#allocation7 + $0xe4] sm:$0xf0]  ;;  %v857_v32 = vld [vmem:[#allocation5 + $0x14] sm:$0xf]  ;;  %v641_v33 = vld [vmem:[#allocation5 + $0x18] sm:$0xf0]  ;;  %411 = vmatpush.bf16.msra.mxu3 %v786_v22  ;;  %v640_v41 = vor.u32 %v858_v29, %v639_v28 }
  0x1f   :  { %v778_v34 = vor.u32 %v892_v31, %v777_v25  ;;  %v705_v35 = vld [vmem:[#allocation7 + $0x50] sm:$0xf]  ;;  %v874_v36 = vld [vmem:[#allocation7 + $0x54] sm:$0xf0]  ;;  %v644_v42 = vor.u32 %v857_v32, %v641_v33  ;;  %v856_v43 = vld [vmem:[#allocation5 + $0x4] sm:$0xf0] }
  0x20   :  { %v769_v37 = vld [vmem:[#allocation7 + $0xd0] sm:$0xf]  ;;  %v890_v38 = vld [vmem:[#allocation7 + $0xd4] sm:$0xf0]  ;;  %v706_v40 = vor.u32 %v874_v36, %v705_v35  ;;  %v697_v44 = vld [vmem:[#allocation7 + $0x40] sm:$0xf] }
  0x21   :  { %174 = vmatpush.bf16.msra.mxu0 %v656_v13  ;;  %187 = vmatpush.bf16.msra.mxu1 %v660_v14  ;;  %v631_v39 = vld [vmem:[#allocation5] sm:$0xf]  ;;  %v872_v45 = vld [vmem:[#allocation7 + $0x44] sm:$0xf0]  ;;  %v855_v46 = vld [vmem:[#allocation5 + $0x4] sm:$0xf]  ;;  %v770_v49 = vor.u32 %v890_v38, %v769_v37 }
  0x22   :  { %399 = vmatpush.bf16.msra.mxu2 %v714_v30  ;;  %v633_v47 = vld [vmem:[#allocation5 + $0x8] sm:$0xf0]  ;;  %v877_v48 = vld [vmem:[#allocation7 + $0x74] sm:$0xf]  ;;  %412 = vmatpush.bf16.msra.mxu3 %v778_v34  ;;  %v723_v50 = vld [vmem:[#allocation7 + $0x78] sm:$0xf0]  ;;  %v698_v53 = vor.u32 %v872_v45, %v697_v44  ;;  %v632_v56 = vor.u32 %v856_v43, %v631_v39 }
  0x23   :  { %v893_v51 = vld [vmem:[#allocation7 + $0xf4] sm:$0xf]  ;;  %v787_v52 = vld [vmem:[#allocation7 + $0xf8] sm:$0xf0]  ;;  %v761_v54 = vld [vmem:[#allocation7 + $0xc0] sm:$0xf]  ;;  %v636_v57 = vor.u32 %v855_v46, %v633_v47  ;;  %v726_v58 = vor.u32 %v877_v48, %v723_v50 }
  0x24   :  { %v888_v55 = vld [vmem:[#allocation7 + $0xc4] sm:$0xf0]  ;;  %v790_v59 = vor.u32 %v893_v51, %v787_v52  ;;  %v875_v60 = vld [vmem:[#allocation7 + $0x64] sm:$0xf]  ;;  %v689_v61 = vld [vmem:[#allocation7 + $0x30] sm:$0xf] }
  0x25   :  { %175 = vmatpush.bf16.msra.mxu0 %v648_v26  ;;  %188 = vmatpush.bf16.msra.mxu1 %v652_v27  ;;  %v870_v62 = vld [vmem:[#allocation7 + $0x34] sm:$0xf0]  ;;  %v715_v63 = vld [vmem:[#allocation7 + $0x68] sm:$0xf0]  ;;  %v891_v0 = vld [vmem:[#allocation7 + $0xe4] sm:$0xf]  ;;  %v762_v2 = vor.u32 %v888_v55, %v761_v54 }
  0x26   :  { %400 = vmatpush.bf16.msra.mxu2 %v706_v40  ;;  %413 = vmatpush.bf16.msra.mxu3 %v770_v49  ;;  %v779_v1 = vld [vmem:[#allocation7 + $0xe8] sm:$0xf0]  ;;  %v753_v3 = vld [vmem:[#allocation7 + $0xb0] sm:$0xf]  ;;  %v886_v4 = vld [vmem:[#allocation7 + $0xb4] sm:$0xf0]  ;;  %v690_v6 = vor.u32 %v870_v62, %v689_v61  ;;  %v718_v7 = vor.u32 %v875_v60, %v715_v63 }
  0x27   :  { %v97_v5 = vld [vmem:[#allocation2] sm:$0xf]  ;;  %v782_v8 = vor.u32 %v891_v0, %v779_v1  ;;  %v681_v10 = vld [vmem:[#allocation7 + $0x20] sm:$0xf]  ;;  %v868_v11 = vld [vmem:[#allocation7 + $0x24] sm:$0xf0]  ;;  %v754_v15 = vor.u32 %v886_v4, %v753_v3 }
  0x28   :  { %v873_v9 = vld [vmem:[#allocation7 + $0x54] sm:$0xf]  ;;  %v707_v12 = vld [vmem:[#allocation7 + $0x58] sm:$0xf0]  ;;  %v745_v16 = vld [vmem:[#allocation7 + $0xa0] sm:$0xf]  ;;  %v682_v18 = vor.u32 %v868_v11, %v681_v10 }
  0x29   :  { %176 = vmatpush.bf16.msra.mxu0 %v640_v41  ;;  %189 = vmatpush.bf16.msra.mxu1 %v644_v42  ;;  %v889_v13 = vld [vmem:[#allocation7 + $0xd4] sm:$0xf]  ;;  %v771_v14 = vld [vmem:[#allocation7 + $0xd8] sm:$0xf0]  ;;  %v884_v17 = vld [vmem:[#allocation7 + $0xa4] sm:$0xf0]  ;;  %v710_v19 = vor.u32 %v873_v9, %v707_v12 }
  0x2a   :  { %401 = vmatpush.bf16.msra.mxu2 %v698_v53  ;;  %414 = vmatpush.bf16.msra.mxu3 %v762_v2  ;;  %v774_v20 = vor.u32 %v889_v13, %v771_v14  ;;  %v871_v21 = vld [vmem:[#allocation7 + $0x44] sm:$0xf]  ;;  %v699_v22 = vld [vmem:[#allocation7 + $0x48] sm:$0xf0]  ;;  %v746_v25 = vor.u32 %v884_v17, %v745_v16  ;;  %v869_v28 = vld [vmem:[#allocation7 + $0x34] sm:$0xf] }
  0x2b   :  { %v887_v23 = vld [vmem:[#allocation7 + $0xc4] sm:$0xf]  ;;  %v763_v24 = vld [vmem:[#allocation7 + $0xc8] sm:$0xf0]  ;;  %v702_v26 = vor.u32 %v871_v21, %v699_v22  ;;  %v691_v29 = vld [vmem:[#allocation7 + $0x38] sm:$0xf0] }
  0x2c   :  { %v766_v27 = vor.u32 %v887_v23, %v763_v24  ;;  %v885_v30 = vld [vmem:[#allocation7 + $0xb4] sm:$0xf]  ;;  %v755_v31 = vld [vmem:[#allocation7 + $0xb8] sm:$0xf0]  ;;  %v694_v32 = vor.u32 %v869_v28, %v691_v29  ;;  %v867_v34 = vld [vmem:[#allocation7 + $0x24] sm:$0xf] }
  0x2d   :  { %177 = vmatpush.bf16.msra.mxu0 %v632_v56  ;;  %190 = vmatpush.bf16.msra.mxu1 %v636_v57  ;;  %v758_v33 = vor.u32 %v885_v30, %v755_v31  ;;  %v683_v35 = vld [vmem:[#allocation7 + $0x28] sm:$0xf0]  ;;  %v883_v36 = vld [vmem:[#allocation7 + $0xa4] sm:$0xf]  ;;  %v673_v40 = vld [vmem:[#allocation7 + $0x10] sm:$0xf] }
  0x2e   :  { %402 = vmatpush.bf16.msra.mxu2 %v690_v6  ;;  %415 = vmatpush.bf16.msra.mxu3 %v754_v15  ;;  %v747_v37 = vld [vmem:[#allocation7 + $0xa8] sm:$0xf0]  ;;  %v686_v38 = vor.u32 %v867_v34, %v683_v35  ;;  %v866_v41 = vld [vmem:[#allocation7 + $0x14] sm:$0xf0]  ;;  %v737_v43 = vld [vmem:[#allocation7 + $0x90] sm:$0xf] }
  0x2f   :  { %v750_v39 = vor.u32 %v883_v36, %v747_v37  ;;  %v674_v42 = vor.u32 %v866_v41, %v673_v40  ;;  %v882_v44 = vld [vmem:[#allocation7 + $0x94] sm:$0xf0]  ;;  %v865_v45 = vld [vmem:[#allocation7 + $0x14] sm:$0xf]  ;;  %v675_v47 = vld [vmem:[#allocation7 + $0x18] sm:$0xf0] }
  0x30   :  { %661 = vmatmul.msk.bf16.vlgmr.msra.gmra.mxu0 %vm159_vm1, %v97_v5  ;;  %662 = vmatmul.msk.bf16.vlgmr.msra.gmra.mxu1 %vm159_vm1, %v97_v5  ;;  %v738_v46 = vor.u32 %v882_v44, %v737_v43  ;;  %v881_v48 = vld [vmem:[#allocation7 + $0x94] sm:$0xf]  ;;  %v678_v49 = vor.u32 %v865_v45, %v675_v47  ;;  %v739_v50 = vld [vmem:[#allocation7 + $0x98] sm:$0xf0]  ;;  %v665_v52 = vld [vmem:[#allocation7] sm:$0xf] }
  0x31   :  { %424 = vmatpush.bf16.msrb.mxu0 %v726_v58  ;;  %437 = vmatpush.bf16.msrb.mxu1 %v790_v59  ;;  %v742_v51 = vor.u32 %v881_v48, %v739_v50  ;;  %v864_v53 = vld [vmem:[#allocation7 + $0x4] sm:$0xf0]  ;;  %v729_v54 = vld [vmem:[#allocation7 + $0x80] sm:$0xf]  ;;  %v863_v57 = vld [vmem:[#allocation7 + $0x4] sm:$0xf] }
  0x32   :  { %403 = vmatpush.bf16.msra.mxu2 %v682_v18  ;;  %416 = vmatpush.bf16.msra.mxu3 %v746_v25  ;;  %v666_v55 = vor.u32 %v864_v53, %v665_v52  ;;  %v880_v56 = vld [vmem:[#allocation7 + $0x84] sm:$0xf0]  ;;  %v667_v58 = vld [vmem:[#allocation7 + $0x8] sm:$0xf0]  ;;  %v879_v61 = vld [vmem:[#allocation7 + $0x84] sm:$0xf] }
  0x33   :  { %v730_v59 = vor.u32 %v880_v56, %v729_v54  ;;  %v670_v60 = vor.u32 %v863_v57, %v667_v58  ;;  %v731_v62 = vld [vmem:[#allocation7 + $0x88] sm:$0xf0]  ;;  %v910_v0 = vld [vmem:[#allocation8 + $0x78] sm:$0xff]  ;;  %v909_v2 = vld [vmem:[#allocation8 + $0x70] sm:$0xff]  ;;  %s1082_s2 = smov [#allocation11]   ;;  %s617_s21 = sshll.u32 %s1143_s5, 4  ;;  %s618_s21 = int_to_ptr.hbm [resolvable:$true] %s617_s21 }
  0x34   :  { %v734_v63 = vor.u32 %v879_v61, %v731_v62  ;;  %v902_v1 = vld [vmem:[#allocation8 + $0x38] sm:$0xff]  ;;  %v901_v3 = vld [vmem:[#allocation8 + $0x30] sm:$0xff]  ;;  %v908_v4 = vld [vmem:[#allocation8 + $0x68] sm:$0xff]  ;;  %s615_s4 = sshll.u32 %s1082_s2, 4  ;;  %s616_s4 = int_to_ptr.vmem [resolvable:$true] %s615_s4 }
  0x35   :  { %425 = vmatpush.bf16.msrb.mxu0 %v718_v7  ;;  %438 = vmatpush.bf16.msrb.mxu1 %v782_v8  ;;  %v900_v5 = vld [vmem:[#allocation8 + $0x28] sm:$0xff]  ;;  %v907_v6 = vld [vmem:[#allocation8 + $0x60] sm:$0xff]  ;;  %v906_v9 = vld [vmem:[#allocation8 + $0x58] sm:$0xff] }
  0x36   :  { %404 = vmatpush.bf16.msra.mxu2 %v674_v42  ;;  %417 = vmatpush.bf16.msra.mxu3 %v738_v46  ;;  %v899_v7 = vld [vmem:[#allocation8 + $0x20] sm:$0xff]  ;;  %v905_v12 = vld [vmem:[#allocation8 + $0x50] sm:$0xff]  ;;  %v898_v25 = vld [vmem:[#allocation8 + $0x18] sm:$0xff] }
  0x37   :  { %v1128_v8 = vld [vmem:[#allocation10] sm:$0x77]  ;;  %v896_v29 = vld [vmem:[#allocation8 + $0x8] sm:$0xff] }
  0x38   :  { %v108_v10 = vperm.slane %v1128_v8, 0  ;;  %v109_v11 = vperm.slane %v1128_v8, 4  ;;  %v903_v28 = vld [vmem:[#allocation8 + $0x40] sm:$0xff]  ;;  %v233_v31 = vperm.slane %v1128_v8, 5  ;;  %v486_v52 = vperm.slane %v1128_v8, 2 }
  0x39   :  { %426 = vmatpush.bf16.msrb.mxu0 %v710_v19  ;;  %439 = vmatpush.bf16.msrb.mxu1 %v774_v20  ;;  %v895_v30 = vld [vmem:[#allocation8] sm:$0xff] }
  0x3a   :  { %405 = vmatpush.bf16.msra.mxu2 %v666_v55  ;;  %418 = vmatpush.bf16.msra.mxu3 %v730_v59  ;;  %v112_v13 = vperm.slane %v108_v10, 0  ;;  %v113_v14 = vperm.slane %v109_v11, 0 }
  0x3d   :  { %427 = vmatpush.bf16.msrb.mxu0 %v702_v26  ;;  %440 = vmatpush.bf16.msrb.mxu1 %v766_v27  ;;  %v904_v26 = vld [vmem:[#allocation8 + $0x48] sm:$0xff]  ;;  %v897_v27 = vld [vmem:[#allocation8 + $0x10] sm:$0xff] }
  0x3e   :  { %596 = vmatpush.bf16.msrb.mxu3 %v910_v0  ;;  %583 = vmatpush.bf16.msrb.mxu2 %v902_v1 }
  0x41   :  { %428 = vmatpush.bf16.msrb.mxu0 %v694_v32  ;;  %441 = vmatpush.bf16.msrb.mxu1 %v758_v33  ;;  %v237_v32 = vperm.slane %v233_v31, 1  ;;  %v232_v33 = vperm.slane %v1128_v8, 1 }
  0x42   :  { %597 = vmatpush.bf16.msrb.mxu3 %v909_v2  ;;  %584 = vmatpush.bf16.msrb.mxu2 %v901_v3 }
  0x43   :  { %v236_v37 = vperm.slane %v232_v33, 1 }
  0x45   :  { %429 = vmatpush.bf16.msrb.mxu0 %v686_v38  ;;  %442 = vmatpush.bf16.msrb.mxu1 %v750_v39 }
  0x46   :  { %598 = vmatpush.bf16.msrb.mxu3 %v908_v4  ;;  %585 = vmatpush.bf16.msrb.mxu2 %v900_v5 }
  0x49   :  { %430 = vmatpush.bf16.msrb.mxu0 %v678_v49  ;;  %443 = vmatpush.bf16.msrb.mxu1 %v742_v51 }
  0x4a   :  { %599 = vmatpush.bf16.msrb.mxu3 %v907_v6  ;;  %586 = vmatpush.bf16.msrb.mxu2 %v899_v7 }
  0x4d   :  { %431 = vmatpush.bf16.msrb.mxu0 %v670_v60  ;;  %444 = vmatpush.bf16.msrb.mxu1 %v734_v63 }
  0x4e   :  { %600 = vmatpush.bf16.msrb.mxu3 %v906_v9  ;;  %587 = vmatpush.bf16.msrb.mxu2 %v898_v25 }
  0x52   :  { %601 = vmatpush.bf16.msrb.mxu3 %v905_v12  ;;  %588 = vmatpush.bf16.msrb.mxu2 %v897_v27 }
  0x56   :  { %602 = vmatpush.bf16.msrb.mxu3 %v904_v26  ;;  %589 = vmatpush.bf16.msrb.mxu2 %v896_v29 }
  0x5a   :  { %603 = vmatpush.bf16.msrb.mxu3 %v903_v28  ;;  %590 = vmatpush.bf16.msrb.mxu2 %v895_v30 }
  0xad   :  { %v179_v15 = vpop.f32.mrf.mxu0  ;;  %v192_v16 = vpop.f32.mrf.mxu1 }
  0xae   :  { %v180_v17 = vadd.f32 %v179_v15, %v112_v13  ;;  %v193_v18 = vadd.f32 %v192_v16, %v113_v14 }
  0xb0   :  { %v196_v19 = vmax.f32 %v180_v17, 0.0  ;;  %v197_v20 = vmax.f32 %v193_v18, 0.0 }
  0xb2   :  { %v198_v21 = vpack.c.bf16 %v196_v19, %v196_v19  ;;  %v199_v22 = vpack.c.bf16 %v197_v20, %v197_v20 }
  0xb4   :  { %406 = vmatmul.bf16.vlgmr.msra.gmra.mxu2 %v198_v21  ;;  %419 = vmatmul.bf16.vlgmr.msra.gmra.mxu3 %v199_v22 }
  0xb5   :  { %432 = vmatmul.bf16.vlgmr.msrb.gmra.mxu0 %v198_v21  ;;  %445 = vmatmul.bf16.vlgmr.msrb.gmra.mxu1 %v199_v22  ;;  %v181_v23 = vpop.f32.mrf.mxu0  ;;  %v194_v24 = vpop.f32.mrf.mxu1 }
 0x132   :  { %v433_v34 = vpop.f32.mrf.mxu0  ;;  %v446_v35 = vpop.f32.mrf.mxu1 }
 0x133   :  { %v434_v36 = vadd.f32 %v433_v34, %v237_v32 }
 0x135   :  { %v447_v38 = vadd.f32 %v446_v35, %v434_v36 }
 0x137   :  { %v451_v39 = vmax.f32 %v447_v38, 0.0  ;;  %v407_v40 = vpop.f32.mrf.mxu2  ;;  %v420_v41 = vpop.f32.mrf.mxu3 }
 0x138   :  { %v408_v42 = vadd.f32 %v407_v40, %v236_v37 }
 0x139   :  { %v453_v43 = vpack.c.bf16 %v451_v39, %v451_v39 }
 0x13a   :  { %v421_v44 = vadd.f32 %v420_v41, %v408_v42  ;;  %v435_v45 = vpop.f32.mrf.mxu0  ;;  %v448_v46 = vpop.f32.mrf.mxu1 }
 0x13b   :  { %604 = vmatmul.bf16.vlgmr.msrb.gmra.mxu3 %v453_v43 }
 0x13c   :  { %v450_v47 = vmax.f32 %v421_v44, 0.0 }
 0x13e   :  { %v452_v48 = vpack.c.bf16 %v450_v47, %v450_v47 }
 0x13f   :  { %v409_v49 = vpop.f32.mrf.mxu2  ;;  %v422_v50 = vpop.f32.mrf.mxu3 }
 0x140   :  { %591 = vmatmul.bf16.vlgmr.msrb.gmra.mxu2 %v452_v48 }
 0x1be   :  { %v605_v51 = vpop.f32.mrf.mxu3 }
 0x1c3   :  { %v592_v53 = vpop.f32.mrf.mxu2 }
 0x1c4   :  { %v593_v54 = vadd.f32 %v592_v53, %v486_v52 }
 0x1c6   :  { %v606_v55 = vadd.f32 %v605_v51, %v593_v54  ;;  %v607_v56 = vpop.f32.mrf.mxu3 }
 0x1c8   :  { %609 = vst [vmem:[#allocation11] sm:$0xff] %v606_v55 }
 0x1c9   :  { %620 = dma.vmem_to_hbm [thread:$0]  %s616_s4, 128, %s618_s21, [#allocation4]  }
 0x1cb   :  { %v594_v57 = vpop.f32.mrf.mxu2 }
 0x1cc   :  { %1071 = dma.done.wait [#allocation4], 128  }
 0x1cd   :  { %1072 = vsyncadd [#allocation4], 4294967168 }
 0x1ce   :  { %625 = vsyncpa [#allocation3], 1 }
 0x1cf   :  { %626 = vsyncpa [#allocation6], 1 }
 0x1d0   :  { %627 = vsyncpa [#allocation9], 1 }
 0x1d1   :  { %628 = vsyncpa [#allocation4], 1 }

</bundles_post_ra>
